<compile_context>
chip_gen: v6e
topology: v6e:2x2x1
jax: 0.10.0
libtpu: 0.0.40
codegen_flags: <defaults>
</compile_context>

<pallas_src>
import functools

import jax
import jax.numpy as jnp
from jax.experimental import pallas as pl
from jax.experimental.pallas import tpu as pltpu

INPUT_FEATURES = 1
HIDDEN = 4                 # all six hidden layers are 4 wide
NUM_HIDDEN_LAYERS = 6
OUTPUT_NEURONS = 1
LANES = 128
PARAM_SLOTS = 128          # 113 real scalars, padded to 128


def _mlp_kernel(p_ref, x_ref, o_ref):
    """p_ref: (PARAM_SLOTS,) f32 in SMEM.  x_ref / o_ref: (block_rows, 128) f32 in VMEM.

    Batch elements live on the sublane x lane axes.  Every layer is expressed as
    scalar-broadcast multiplies/adds (VPU) + tanh (EUP); the MXU is never used.
    """
    x = x_ref[...].astype(jnp.float32)

    # layer1: 1 -> 4   (w1[0, j] at p[j], b1[j] at p[4 + j])
    h = [jnp.tanh(x * p_ref[j] + p_ref[4 + j]) for j in range(HIDDEN)]

    # layers 2..6: 4 -> 4
    # per layer: w row-major at [off : off+16] (w[k, j] at off + k*4 + j),
    #            b at [off+16 : off+20]
    off = 8
    for _ in range(NUM_HIDDEN_LAYERS - 1):
        new_h = []
        for j in range(HIDDEN):
            acc = h[0] * p_ref[off + j]
            for k in range(1, HIDDEN):
                acc = acc + h[k] * p_ref[off + k * HIDDEN + j]
            new_h.append(jnp.tanh(acc + p_ref[off + HIDDEN * HIDDEN + j]))
        h = new_h
        off += HIDDEN * HIDDEN + HIDDEN

    # output layer: 4 -> 1 (w at [off : off+4], b at [off+4]); identity activation.
    out = h[0] * p_ref[off]
    for k in range(1, HIDDEN):
        out = out + h[k] * p_ref[off + k]
    out = out + p_ref[off + HIDDEN]
    o_ref[...] = out.astype(o_ref.dtype)


def pack_params(params):
    """Flatten [(w, b), ...] into one (PARAM_SLOTS,) f32 vector (row-major weights)."""
    pieces = []
    for w, b in params:
        pieces.append(jnp.ravel(w.astype(jnp.float32)))
        pieces.append(jnp.ravel(b.astype(jnp.float32)))
    flat = jnp.concatenate(pieces)
    return jnp.pad(flat, (0, PARAM_SLOTS - flat.shape[0]))


@functools.partial(jax.jit, static_argnames=("block_rows",))
def neural_network2_forward(x, params, block_rows=512):
    """x: (B, 1) f32 -> (B, 1) f32.  Lane-dense, VPU-only Pallas forward pass."""
    B, F = x.shape
    assert F == INPUT_FEATURES

    packed = pack_params(params)

    # Lane-dense layout: batch lives on (sublane, lane); last dim is 128.
    rows = max(8, -(-B // LANES))          # ceil(B / 128), at least 8 sublanes
    rows = -(-rows // 8) * 8               # multiple of 8
    blk = max(8, min(block_rows, rows))
    blk = (blk // 8) * 8                   # block rows multiple of 8
    rows = -(-rows // blk) * blk           # rows multiple of block
    padded = rows * LANES

    x_flat = jnp.ravel(x.astype(jnp.float32))
    x2d = jnp.pad(x_flat, (0, padded - B)).reshape(rows, LANES)

    out2d = pl.pallas_call(
        _mlp_kernel,
        out_shape=jax.ShapeDtypeStruct((rows, LANES), jnp.float32),
        grid=(rows // blk,),
        in_specs=[
            pl.BlockSpec(memory_space=pltpu.MemorySpace.SMEM),   # packed scalar params
            pl.BlockSpec((blk, LANES), lambda i: (i, 0)),        # lane-dense activations
        ],
        out_specs=pl.BlockSpec((blk, LANES), lambda i: (i, 0)),
        compiler_params=pltpu.CompilerParams(
            dimension_semantics=("parallel",),
        ),
    )(packed, x2d)

    return out2d.reshape(-1)[:B].reshape(B, OUTPUT_NEURONS).astype(x.dtype)


def init_params(key):
    """Deterministic PyTorch-style init: U(-1/sqrt(fan_in), 1/sqrt(fan_in))."""
    dims = (INPUT_FEATURES,) + (HIDDEN,) * NUM_HIDDEN_LAYERS + (OUTPUT_NEURONS,)
    params = []
    for i in range(len(dims) - 1):
        fan_in, fan_out = dims[i], dims[i + 1]
        key, kw, kb = jax.random.split(key, 3)
        bound = 1.0 / (fan_in ** 0.5)
        w = jax.random.uniform(kw, (fan_in, fan_out), jnp.float32, -bound, bound)
        b = jax.random.uniform(kb, (1, fan_out), jnp.float32, -bound, bound)
        params.append((w, b))
    return params


def reference_forward(x, params):
    # Pure elementwise f32 reference (no MXU / bf16 matmul truncation).
    h = x
    for i, (w, b) in enumerate(params):
        h = jnp.sum(h[:, :, None] * w[None, :, :], axis=1) + b
        if i < len(params) - 1:
            h = jnp.tanh(h)
    return h


if __name__ == "__main__":
    key = jax.random.PRNGKey(0)
    kx, kp = jax.random.split(key)

    B = 16  # small batch (kernel pads to one (8, 128) lane-dense tile)
    x = jax.random.normal(kx, (B, INPUT_FEATURES), dtype=jnp.float32)
    params = init_params(kp)

    out = neural_network2_forward(x, params)
    out = jax.block_until_ready(out)

    ref = reference_forward(x, params)
    assert out.shape == (B, OUTPUT_NEURONS)
    assert jnp.allclose(out, ref, atol=1e-5, rtol=1e-5), "mismatch vs reference"

    print("KERNEL_OK")
</pallas_src>

<mosaic_0001>
module attributes {stable_mosaic.version = 11 : i64} {
  func.func @_mlp_kernel(%arg0: i32, %arg1: memref<128xf32, #tpu.memory_space<smem>>, %arg2: memref<8x128xf32, #tpu.memory_space<vmem>>, %arg3: memref<8x128xf32, #tpu.memory_space<vmem>>) attributes {dimension_semantics = [#tpu.dimension_semantics<parallel>], iteration_bounds = array<i64: 1>, scalar_prefetch = 0 : i64, scratch_operands = 0 : i64, tpu.core_type = #tpu.core_type<tc>, window_params = [{transform_indices = @transform_0, window_bounds = array<i64: 128>}, {transform_indices = @transform_1, window_bounds = array<i64: 8, 128>}, {transform_indices = @transform_2, window_bounds = array<i64: 8, 128>}]} {
    %c0 = arith.constant 0 : index
    %c0_0 = arith.constant 0 : index
    %0 = vector.load %arg2[%c0, %c0_0] : memref<8x128xf32, #tpu.memory_space<vmem>>, vector<8x128xf32>
    %c0_1 = arith.constant 0 : index
    %1 = memref.load %arg1[%c0_1] : memref<128xf32, #tpu.memory_space<smem>>
    %2 = vector.broadcast %1 : f32 to vector<8x128xf32>
    %3 = arith.mulf %0, %2 : vector<8x128xf32>
    %c4 = arith.constant 4 : index
    %4 = memref.load %arg1[%c4] : memref<128xf32, #tpu.memory_space<smem>>
    %5 = vector.broadcast %4 : f32 to vector<8x128xf32>
    %6 = arith.addf %3, %5 : vector<8x128xf32>
    %7 = math.tanh %6 : vector<8x128xf32>
    %c1 = arith.constant 1 : index
    %8 = memref.load %arg1[%c1] : memref<128xf32, #tpu.memory_space<smem>>
    %9 = vector.broadcast %8 : f32 to vector<8x128xf32>
    %10 = arith.mulf %0, %9 : vector<8x128xf32>
    %c5 = arith.constant 5 : index
    %11 = memref.load %arg1[%c5] : memref<128xf32, #tpu.memory_space<smem>>
    %12 = vector.broadcast %11 : f32 to vector<8x128xf32>
    %13 = arith.addf %10, %12 : vector<8x128xf32>
    %14 = math.tanh %13 : vector<8x128xf32>
    %c2 = arith.constant 2 : index
    %15 = memref.load %arg1[%c2] : memref<128xf32, #tpu.memory_space<smem>>
    %16 = vector.broadcast %15 : f32 to vector<8x128xf32>
    %17 = arith.mulf %0, %16 : vector<8x128xf32>
    %c6 = arith.constant 6 : index
    %18 = memref.load %arg1[%c6] : memref<128xf32, #tpu.memory_space<smem>>
    %19 = vector.broadcast %18 : f32 to vector<8x128xf32>
    %20 = arith.addf %17, %19 : vector<8x128xf32>
    %21 = math.tanh %20 : vector<8x128xf32>
    %c3 = arith.constant 3 : index
    %22 = memref.load %arg1[%c3] : memref<128xf32, #tpu.memory_space<smem>>
    %23 = vector.broadcast %22 : f32 to vector<8x128xf32>
    %24 = arith.mulf %0, %23 : vector<8x128xf32>
    %c7 = arith.constant 7 : index
    %25 = memref.load %arg1[%c7] : memref<128xf32, #tpu.memory_space<smem>>
    %26 = vector.broadcast %25 : f32 to vector<8x128xf32>
    %27 = arith.addf %24, %26 : vector<8x128xf32>
    %28 = math.tanh %27 : vector<8x128xf32>
    %c8 = arith.constant 8 : index
    %29 = memref.load %arg1[%c8] : memref<128xf32, #tpu.memory_space<smem>>
    %30 = vector.broadcast %29 : f32 to vector<8x128xf32>
    %31 = arith.mulf %7, %30 : vector<8x128xf32>
    %c12 = arith.constant 12 : index
    %32 = memref.load %arg1[%c12] : memref<128xf32, #tpu.memory_space<smem>>
    %33 = vector.broadcast %32 : f32 to vector<8x128xf32>
    %34 = arith.mulf %14, %33 : vector<8x128xf32>
    %35 = arith.addf %31, %34 : vector<8x128xf32>
    %c16 = arith.constant 16 : index
    %36 = memref.load %arg1[%c16] : memref<128xf32, #tpu.memory_space<smem>>
    %37 = vector.broadcast %36 : f32 to vector<8x128xf32>
    %38 = arith.mulf %21, %37 : vector<8x128xf32>
    %39 = arith.addf %35, %38 : vector<8x128xf32>
    %c20 = arith.constant 20 : index
    %40 = memref.load %arg1[%c20] : memref<128xf32, #tpu.memory_space<smem>>
    %41 = vector.broadcast %40 : f32 to vector<8x128xf32>
    %42 = arith.mulf %28, %41 : vector<8x128xf32>
    %43 = arith.addf %39, %42 : vector<8x128xf32>
    %c24 = arith.constant 24 : index
    %44 = memref.load %arg1[%c24] : memref<128xf32, #tpu.memory_space<smem>>
    %45 = vector.broadcast %44 : f32 to vector<8x128xf32>
    %46 = arith.addf %43, %45 : vector<8x128xf32>
    %47 = math.tanh %46 : vector<8x128xf32>
    %c9 = arith.constant 9 : index
    %48 = memref.load %arg1[%c9] : memref<128xf32, #tpu.memory_space<smem>>
    %49 = vector.broadcast %48 : f32 to vector<8x128xf32>
    %50 = arith.mulf %7, %49 : vector<8x128xf32>
    %c13 = arith.constant 13 : index
    %51 = memref.load %arg1[%c13] : memref<128xf32, #tpu.memory_space<smem>>
    %52 = vector.broadcast %51 : f32 to vector<8x128xf32>
    %53 = arith.mulf %14, %52 : vector<8x128xf32>
    %54 = arith.addf %50, %53 : vector<8x128xf32>
    %c17 = arith.constant 17 : index
    %55 = memref.load %arg1[%c17] : memref<128xf32, #tpu.memory_space<smem>>
    %56 = vector.broadcast %55 : f32 to vector<8x128xf32>
    %57 = arith.mulf %21, %56 : vector<8x128xf32>
    %58 = arith.addf %54, %57 : vector<8x128xf32>
    %c21 = arith.constant 21 : index
    %59 = memref.load %arg1[%c21] : memref<128xf32, #tpu.memory_space<smem>>
    %60 = vector.broadcast %59 : f32 to vector<8x128xf32>
    %61 = arith.mulf %28, %60 : vector<8x128xf32>
    %62 = arith.addf %58, %61 : vector<8x128xf32>
    %c25 = arith.constant 25 : index
    %63 = memref.load %arg1[%c25] : memref<128xf32, #tpu.memory_space<smem>>
    %64 = vector.broadcast %63 : f32 to vector<8x128xf32>
    %65 = arith.addf %62, %64 : vector<8x128xf32>
    %66 = math.tanh %65 : vector<8x128xf32>
    %c10 = arith.constant 10 : index
    %67 = memref.load %arg1[%c10] : memref<128xf32, #tpu.memory_space<smem>>
    %68 = vector.broadcast %67 : f32 to vector<8x128xf32>
    %69 = arith.mulf %7, %68 : vector<8x128xf32>
    %c14 = arith.constant 14 : index
    %70 = memref.load %arg1[%c14] : memref<128xf32, #tpu.memory_space<smem>>
    %71 = vector.broadcast %70 : f32 to vector<8x128xf32>
    %72 = arith.mulf %14, %71 : vector<8x128xf32>
    %73 = arith.addf %69, %72 : vector<8x128xf32>
    %c18 = arith.constant 18 : index
    %74 = memref.load %arg1[%c18] : memref<128xf32, #tpu.memory_space<smem>>
    %75 = vector.broadcast %74 : f32 to vector<8x128xf32>
    %76 = arith.mulf %21, %75 : vector<8x128xf32>
    %77 = arith.addf %73, %76 : vector<8x128xf32>
    %c22 = arith.constant 22 : index
    %78 = memref.load %arg1[%c22] : memref<128xf32, #tpu.memory_space<smem>>
    %79 = vector.broadcast %78 : f32 to vector<8x128xf32>
    %80 = arith.mulf %28, %79 : vector<8x128xf32>
    %81 = arith.addf %77, %80 : vector<8x128xf32>
    %c26 = arith.constant 26 : index
    %82 = memref.load %arg1[%c26] : memref<128xf32, #tpu.memory_space<smem>>
    %83 = vector.broadcast %82 : f32 to vector<8x128xf32>
    %84 = arith.addf %81, %83 : vector<8x128xf32>
    %85 = math.tanh %84 : vector<8x128xf32>
    %c11 = arith.constant 11 : index
    %86 = memref.load %arg1[%c11] : memref<128xf32, #tpu.memory_space<smem>>
    %87 = vector.broadcast %86 : f32 to vector<8x128xf32>
    %88 = arith.mulf %7, %87 : vector<8x128xf32>
    %c15 = arith.constant 15 : index
    %89 = memref.load %arg1[%c15] : memref<128xf32, #tpu.memory_space<smem>>
    %90 = vector.broadcast %89 : f32 to vector<8x128xf32>
    %91 = arith.mulf %14, %90 : vector<8x128xf32>
    %92 = arith.addf %88, %91 : vector<8x128xf32>
    %c19 = arith.constant 19 : index
    %93 = memref.load %arg1[%c19] : memref<128xf32, #tpu.memory_space<smem>>
    %94 = vector.broadcast %93 : f32 to vector<8x128xf32>
    %95 = arith.mulf %21, %94 : vector<8x128xf32>
    %96 = arith.addf %92, %95 : vector<8x128xf32>
    %c23 = arith.constant 23 : index
    %97 = memref.load %arg1[%c23] : memref<128xf32, #tpu.memory_space<smem>>
    %98 = vector.broadcast %97 : f32 to vector<8x128xf32>
    %99 = arith.mulf %28, %98 : vector<8x128xf32>
    %100 = arith.addf %96, %99 : vector<8x128xf32>
    %c27 = arith.constant 27 : index
    %101 = memref.load %arg1[%c27] : memref<128xf32, #tpu.memory_space<smem>>
    %102 = vector.broadcast %101 : f32 to vector<8x128xf32>
    %103 = arith.addf %100, %102 : vector<8x128xf32>
    %104 = math.tanh %103 : vector<8x128xf32>
    %c28 = arith.constant 28 : index
    %105 = memref.load %arg1[%c28] : memref<128xf32, #tpu.memory_space<smem>>
    %106 = vector.broadcast %105 : f32 to vector<8x128xf32>
    %107 = arith.mulf %47, %106 : vector<8x128xf32>
    %c32 = arith.constant 32 : index
    %108 = memref.load %arg1[%c32] : memref<128xf32, #tpu.memory_space<smem>>
    %109 = vector.broadcast %108 : f32 to vector<8x128xf32>
    %110 = arith.mulf %66, %109 : vector<8x128xf32>
    %111 = arith.addf %107, %110 : vector<8x128xf32>
    %c36 = arith.constant 36 : index
    %112 = memref.load %arg1[%c36] : memref<128xf32, #tpu.memory_space<smem>>
    %113 = vector.broadcast %112 : f32 to vector<8x128xf32>
    %114 = arith.mulf %85, %113 : vector<8x128xf32>
    %115 = arith.addf %111, %114 : vector<8x128xf32>
    %c40 = arith.constant 40 : index
    %116 = memref.load %arg1[%c40] : memref<128xf32, #tpu.memory_space<smem>>
    %117 = vector.broadcast %116 : f32 to vector<8x128xf32>
    %118 = arith.mulf %104, %117 : vector<8x128xf32>
    %119 = arith.addf %115, %118 : vector<8x128xf32>
    %c44 = arith.constant 44 : index
    %120 = memref.load %arg1[%c44] : memref<128xf32, #tpu.memory_space<smem>>
    %121 = vector.broadcast %120 : f32 to vector<8x128xf32>
    %122 = arith.addf %119, %121 : vector<8x128xf32>
    %123 = math.tanh %122 : vector<8x128xf32>
    %c29 = arith.constant 29 : index
    %124 = memref.load %arg1[%c29] : memref<128xf32, #tpu.memory_space<smem>>
    %125 = vector.broadcast %124 : f32 to vector<8x128xf32>
    %126 = arith.mulf %47, %125 : vector<8x128xf32>
    %c33 = arith.constant 33 : index
    %127 = memref.load %arg1[%c33] : memref<128xf32, #tpu.memory_space<smem>>
    %128 = vector.broadcast %127 : f32 to vector<8x128xf32>
    %129 = arith.mulf %66, %128 : vector<8x128xf32>
    %130 = arith.addf %126, %129 : vector<8x128xf32>
    %c37 = arith.constant 37 : index
    %131 = memref.load %arg1[%c37] : memref<128xf32, #tpu.memory_space<smem>>
    %132 = vector.broadcast %131 : f32 to vector<8x128xf32>
    %133 = arith.mulf %85, %132 : vector<8x128xf32>
    %134 = arith.addf %130, %133 : vector<8x128xf32>
    %c41 = arith.constant 41 : index
    %135 = memref.load %arg1[%c41] : memref<128xf32, #tpu.memory_space<smem>>
    %136 = vector.broadcast %135 : f32 to vector<8x128xf32>
    %137 = arith.mulf %104, %136 : vector<8x128xf32>
    %138 = arith.addf %134, %137 : vector<8x128xf32>
    %c45 = arith.constant 45 : index
    %139 = memref.load %arg1[%c45] : memref<128xf32, #tpu.memory_space<smem>>
    %140 = vector.broadcast %139 : f32 to vector<8x128xf32>
    %141 = arith.addf %138, %140 : vector<8x128xf32>
    %142 = math.tanh %141 : vector<8x128xf32>
    %c30 = arith.constant 30 : index
    %143 = memref.load %arg1[%c30] : memref<128xf32, #tpu.memory_space<smem>>
    %144 = vector.broadcast %143 : f32 to vector<8x128xf32>
    %145 = arith.mulf %47, %144 : vector<8x128xf32>
    %c34 = arith.constant 34 : index
    %146 = memref.load %arg1[%c34] : memref<128xf32, #tpu.memory_space<smem>>
    %147 = vector.broadcast %146 : f32 to vector<8x128xf32>
    %148 = arith.mulf %66, %147 : vector<8x128xf32>
    %149 = arith.addf %145, %148 : vector<8x128xf32>
    %c38 = arith.constant 38 : index
    %150 = memref.load %arg1[%c38] : memref<128xf32, #tpu.memory_space<smem>>
    %151 = vector.broadcast %150 : f32 to vector<8x128xf32>
    %152 = arith.mulf %85, %151 : vector<8x128xf32>
    %153 = arith.addf %149, %152 : vector<8x128xf32>
    %c42 = arith.constant 42 : index
    %154 = memref.load %arg1[%c42] : memref<128xf32, #tpu.memory_space<smem>>
    %155 = vector.broadcast %154 : f32 to vector<8x128xf32>
    %156 = arith.mulf %104, %155 : vector<8x128xf32>
    %157 = arith.addf %153, %156 : vector<8x128xf32>
    %c46 = arith.constant 46 : index
    %158 = memref.load %arg1[%c46] : memref<128xf32, #tpu.memory_space<smem>>
    %159 = vector.broadcast %158 : f32 to vector<8x128xf32>
    %160 = arith.addf %157, %159 : vector<8x128xf32>
    %161 = math.tanh %160 : vector<8x128xf32>
    %c31 = arith.constant 31 : index
    %162 = memref.load %arg1[%c31] : memref<128xf32, #tpu.memory_space<smem>>
    %163 = vector.broadcast %162 : f32 to vector<8x128xf32>
    %164 = arith.mulf %47, %163 : vector<8x128xf32>
    %c35 = arith.constant 35 : index
    %165 = memref.load %arg1[%c35] : memref<128xf32, #tpu.memory_space<smem>>
    %166 = vector.broadcast %165 : f32 to vector<8x128xf32>
    %167 = arith.mulf %66, %166 : vector<8x128xf32>
    %168 = arith.addf %164, %167 : vector<8x128xf32>
    %c39 = arith.constant 39 : index
    %169 = memref.load %arg1[%c39] : memref<128xf32, #tpu.memory_space<smem>>
    %170 = vector.broadcast %169 : f32 to vector<8x128xf32>
    %171 = arith.mulf %85, %170 : vector<8x128xf32>
    %172 = arith.addf %168, %171 : vector<8x128xf32>
    %c43 = arith.constant 43 : index
    %173 = memref.load %arg1[%c43] : memref<128xf32, #tpu.memory_space<smem>>
    %174 = vector.broadcast %173 : f32 to vector<8x128xf32>
    %175 = arith.mulf %104, %174 : vector<8x128xf32>
    %176 = arith.addf %172, %175 : vector<8x128xf32>
    %c47 = arith.constant 47 : index
    %177 = memref.load %arg1[%c47] : memref<128xf32, #tpu.memory_space<smem>>
    %178 = vector.broadcast %177 : f32 to vector<8x128xf32>
    %179 = arith.addf %176, %178 : vector<8x128xf32>
    %180 = math.tanh %179 : vector<8x128xf32>
    %c48 = arith.constant 48 : index
    %181 = memref.load %arg1[%c48] : memref<128xf32, #tpu.memory_space<smem>>
    %182 = vector.broadcast %181 : f32 to vector<8x128xf32>
    %183 = arith.mulf %123, %182 : vector<8x128xf32>
    %c52 = arith.constant 52 : index
    %184 = memref.load %arg1[%c52] : memref<128xf32, #tpu.memory_space<smem>>
    %185 = vector.broadcast %184 : f32 to vector<8x128xf32>
    %186 = arith.mulf %142, %185 : vector<8x128xf32>
    %187 = arith.addf %183, %186 : vector<8x128xf32>
    %c56 = arith.constant 56 : index
    %188 = memref.load %arg1[%c56] : memref<128xf32, #tpu.memory_space<smem>>
    %189 = vector.broadcast %188 : f32 to vector<8x128xf32>
    %190 = arith.mulf %161, %189 : vector<8x128xf32>
    %191 = arith.addf %187, %190 : vector<8x128xf32>
    %c60 = arith.constant 60 : index
    %192 = memref.load %arg1[%c60] : memref<128xf32, #tpu.memory_space<smem>>
    %193 = vector.broadcast %192 : f32 to vector<8x128xf32>
    %194 = arith.mulf %180, %193 : vector<8x128xf32>
    %195 = arith.addf %191, %194 : vector<8x128xf32>
    %c64 = arith.constant 64 : index
    %196 = memref.load %arg1[%c64] : memref<128xf32, #tpu.memory_space<smem>>
    %197 = vector.broadcast %196 : f32 to vector<8x128xf32>
    %198 = arith.addf %195, %197 : vector<8x128xf32>
    %199 = math.tanh %198 : vector<8x128xf32>
    %c49 = arith.constant 49 : index
    %200 = memref.load %arg1[%c49] : memref<128xf32, #tpu.memory_space<smem>>
    %201 = vector.broadcast %200 : f32 to vector<8x128xf32>
    %202 = arith.mulf %123, %201 : vector<8x128xf32>
    %c53 = arith.constant 53 : index
    %203 = memref.load %arg1[%c53] : memref<128xf32, #tpu.memory_space<smem>>
    %204 = vector.broadcast %203 : f32 to vector<8x128xf32>
    %205 = arith.mulf %142, %204 : vector<8x128xf32>
    %206 = arith.addf %202, %205 : vector<8x128xf32>
    %c57 = arith.constant 57 : index
    %207 = memref.load %arg1[%c57] : memref<128xf32, #tpu.memory_space<smem>>
    %208 = vector.broadcast %207 : f32 to vector<8x128xf32>
    %209 = arith.mulf %161, %208 : vector<8x128xf32>
    %210 = arith.addf %206, %209 : vector<8x128xf32>
    %c61 = arith.constant 61 : index
    %211 = memref.load %arg1[%c61] : memref<128xf32, #tpu.memory_space<smem>>
    %212 = vector.broadcast %211 : f32 to vector<8x128xf32>
    %213 = arith.mulf %180, %212 : vector<8x128xf32>
    %214 = arith.addf %210, %213 : vector<8x128xf32>
    %c65 = arith.constant 65 : index
    %215 = memref.load %arg1[%c65] : memref<128xf32, #tpu.memory_space<smem>>
    %216 = vector.broadcast %215 : f32 to vector<8x128xf32>
    %217 = arith.addf %214, %216 : vector<8x128xf32>
    %218 = math.tanh %217 : vector<8x128xf32>
    %c50 = arith.constant 50 : index
    %219 = memref.load %arg1[%c50] : memref<128xf32, #tpu.memory_space<smem>>
    %220 = vector.broadcast %219 : f32 to vector<8x128xf32>
    %221 = arith.mulf %123, %220 : vector<8x128xf32>
    %c54 = arith.constant 54 : index
    %222 = memref.load %arg1[%c54] : memref<128xf32, #tpu.memory_space<smem>>
    %223 = vector.broadcast %222 : f32 to vector<8x128xf32>
    %224 = arith.mulf %142, %223 : vector<8x128xf32>
    %225 = arith.addf %221, %224 : vector<8x128xf32>
    %c58 = arith.constant 58 : index
    %226 = memref.load %arg1[%c58] : memref<128xf32, #tpu.memory_space<smem>>
    %227 = vector.broadcast %226 : f32 to vector<8x128xf32>
    %228 = arith.mulf %161, %227 : vector<8x128xf32>
    %229 = arith.addf %225, %228 : vector<8x128xf32>
    %c62 = arith.constant 62 : index
    %230 = memref.load %arg1[%c62] : memref<128xf32, #tpu.memory_space<smem>>
    %231 = vector.broadcast %230 : f32 to vector<8x128xf32>
    %232 = arith.mulf %180, %231 : vector<8x128xf32>
    %233 = arith.addf %229, %232 : vector<8x128xf32>
    %c66 = arith.constant 66 : index
    %234 = memref.load %arg1[%c66] : memref<128xf32, #tpu.memory_space<smem>>
    %235 = vector.broadcast %234 : f32 to vector<8x128xf32>
    %236 = arith.addf %233, %235 : vector<8x128xf32>
    %237 = math.tanh %236 : vector<8x128xf32>
    %c51 = arith.constant 51 : index
    %238 = memref.load %arg1[%c51] : memref<128xf32, #tpu.memory_space<smem>>
    %239 = vector.broadcast %238 : f32 to vector<8x128xf32>
    %240 = arith.mulf %123, %239 : vector<8x128xf32>
    %c55 = arith.constant 55 : index
    %241 = memref.load %arg1[%c55] : memref<128xf32, #tpu.memory_space<smem>>
    %242 = vector.broadcast %241 : f32 to vector<8x128xf32>
    %243 = arith.mulf %142, %242 : vector<8x128xf32>
    %244 = arith.addf %240, %243 : vector<8x128xf32>
    %c59 = arith.constant 59 : index
    %245 = memref.load %arg1[%c59] : memref<128xf32, #tpu.memory_space<smem>>
    %246 = vector.broadcast %245 : f32 to vector<8x128xf32>
    %247 = arith.mulf %161, %246 : vector<8x128xf32>
    %248 = arith.addf %244, %247 : vector<8x128xf32>
    %c63 = arith.constant 63 : index
    %249 = memref.load %arg1[%c63] : memref<128xf32, #tpu.memory_space<smem>>
    %250 = vector.broadcast %249 : f32 to vector<8x128xf32>
    %251 = arith.mulf %180, %250 : vector<8x128xf32>
    %252 = arith.addf %248, %251 : vector<8x128xf32>
    %c67 = arith.constant 67 : index
    %253 = memref.load %arg1[%c67] : memref<128xf32, #tpu.memory_space<smem>>
    %254 = vector.broadcast %253 : f32 to vector<8x128xf32>
    %255 = arith.addf %252, %254 : vector<8x128xf32>
    %256 = math.tanh %255 : vector<8x128xf32>
    %c68 = arith.constant 68 : index
    %257 = memref.load %arg1[%c68] : memref<128xf32, #tpu.memory_space<smem>>
    %258 = vector.broadcast %257 : f32 to vector<8x128xf32>
    %259 = arith.mulf %199, %258 : vector<8x128xf32>
    %c72 = arith.constant 72 : index
    %260 = memref.load %arg1[%c72] : memref<128xf32, #tpu.memory_space<smem>>
    %261 = vector.broadcast %260 : f32 to vector<8x128xf32>
    %262 = arith.mulf %218, %261 : vector<8x128xf32>
    %263 = arith.addf %259, %262 : vector<8x128xf32>
    %c76 = arith.constant 76 : index
    %264 = memref.load %arg1[%c76] : memref<128xf32, #tpu.memory_space<smem>>
    %265 = vector.broadcast %264 : f32 to vector<8x128xf32>
    %266 = arith.mulf %237, %265 : vector<8x128xf32>
    %267 = arith.addf %263, %266 : vector<8x128xf32>
    %c80 = arith.constant 80 : index
    %268 = memref.load %arg1[%c80] : memref<128xf32, #tpu.memory_space<smem>>
    %269 = vector.broadcast %268 : f32 to vector<8x128xf32>
    %270 = arith.mulf %256, %269 : vector<8x128xf32>
    %271 = arith.addf %267, %270 : vector<8x128xf32>
    %c84 = arith.constant 84 : index
    %272 = memref.load %arg1[%c84] : memref<128xf32, #tpu.memory_space<smem>>
    %273 = vector.broadcast %272 : f32 to vector<8x128xf32>
    %274 = arith.addf %271, %273 : vector<8x128xf32>
    %275 = math.tanh %274 : vector<8x128xf32>
    %c69 = arith.constant 69 : index
    %276 = memref.load %arg1[%c69] : memref<128xf32, #tpu.memory_space<smem>>
    %277 = vector.broadcast %276 : f32 to vector<8x128xf32>
    %278 = arith.mulf %199, %277 : vector<8x128xf32>
    %c73 = arith.constant 73 : index
    %279 = memref.load %arg1[%c73] : memref<128xf32, #tpu.memory_space<smem>>
    %280 = vector.broadcast %279 : f32 to vector<8x128xf32>
    %281 = arith.mulf %218, %280 : vector<8x128xf32>
    %282 = arith.addf %278, %281 : vector<8x128xf32>
    %c77 = arith.constant 77 : index
    %283 = memref.load %arg1[%c77] : memref<128xf32, #tpu.memory_space<smem>>
    %284 = vector.broadcast %283 : f32 to vector<8x128xf32>
    %285 = arith.mulf %237, %284 : vector<8x128xf32>
    %286 = arith.addf %282, %285 : vector<8x128xf32>
    %c81 = arith.constant 81 : index
    %287 = memref.load %arg1[%c81] : memref<128xf32, #tpu.memory_space<smem>>
    %288 = vector.broadcast %287 : f32 to vector<8x128xf32>
    %289 = arith.mulf %256, %288 : vector<8x128xf32>
    %290 = arith.addf %286, %289 : vector<8x128xf32>
    %c85 = arith.constant 85 : index
    %291 = memref.load %arg1[%c85] : memref<128xf32, #tpu.memory_space<smem>>
    %292 = vector.broadcast %291 : f32 to vector<8x128xf32>
    %293 = arith.addf %290, %292 : vector<8x128xf32>
    %294 = math.tanh %293 : vector<8x128xf32>
    %c70 = arith.constant 70 : index
    %295 = memref.load %arg1[%c70] : memref<128xf32, #tpu.memory_space<smem>>
    %296 = vector.broadcast %295 : f32 to vector<8x128xf32>
    %297 = arith.mulf %199, %296 : vector<8x128xf32>
    %c74 = arith.constant 74 : index
    %298 = memref.load %arg1[%c74] : memref<128xf32, #tpu.memory_space<smem>>
    %299 = vector.broadcast %298 : f32 to vector<8x128xf32>
    %300 = arith.mulf %218, %299 : vector<8x128xf32>
    %301 = arith.addf %297, %300 : vector<8x128xf32>
    %c78 = arith.constant 78 : index
    %302 = memref.load %arg1[%c78] : memref<128xf32, #tpu.memory_space<smem>>
    %303 = vector.broadcast %302 : f32 to vector<8x128xf32>
    %304 = arith.mulf %237, %303 : vector<8x128xf32>
    %305 = arith.addf %301, %304 : vector<8x128xf32>
    %c82 = arith.constant 82 : index
    %306 = memref.load %arg1[%c82] : memref<128xf32, #tpu.memory_space<smem>>
    %307 = vector.broadcast %306 : f32 to vector<8x128xf32>
    %308 = arith.mulf %256, %307 : vector<8x128xf32>
    %309 = arith.addf %305, %308 : vector<8x128xf32>
    %c86 = arith.constant 86 : index
    %310 = memref.load %arg1[%c86] : memref<128xf32, #tpu.memory_space<smem>>
    %311 = vector.broadcast %310 : f32 to vector<8x128xf32>
    %312 = arith.addf %309, %311 : vector<8x128xf32>
    %313 = math.tanh %312 : vector<8x128xf32>
    %c71 = arith.constant 71 : index
    %314 = memref.load %arg1[%c71] : memref<128xf32, #tpu.memory_space<smem>>
    %315 = vector.broadcast %314 : f32 to vector<8x128xf32>
    %316 = arith.mulf %199, %315 : vector<8x128xf32>
    %c75 = arith.constant 75 : index
    %317 = memref.load %arg1[%c75] : memref<128xf32, #tpu.memory_space<smem>>
    %318 = vector.broadcast %317 : f32 to vector<8x128xf32>
    %319 = arith.mulf %218, %318 : vector<8x128xf32>
    %320 = arith.addf %316, %319 : vector<8x128xf32>
    %c79 = arith.constant 79 : index
    %321 = memref.load %arg1[%c79] : memref<128xf32, #tpu.memory_space<smem>>
    %322 = vector.broadcast %321 : f32 to vector<8x128xf32>
    %323 = arith.mulf %237, %322 : vector<8x128xf32>
    %324 = arith.addf %320, %323 : vector<8x128xf32>
    %c83 = arith.constant 83 : index
    %325 = memref.load %arg1[%c83] : memref<128xf32, #tpu.memory_space<smem>>
    %326 = vector.broadcast %325 : f32 to vector<8x128xf32>
    %327 = arith.mulf %256, %326 : vector<8x128xf32>
    %328 = arith.addf %324, %327 : vector<8x128xf32>
    %c87 = arith.constant 87 : index
    %329 = memref.load %arg1[%c87] : memref<128xf32, #tpu.memory_space<smem>>
    %330 = vector.broadcast %329 : f32 to vector<8x128xf32>
    %331 = arith.addf %328, %330 : vector<8x128xf32>
    %332 = math.tanh %331 : vector<8x128xf32>
    %c88 = arith.constant 88 : index
    %333 = memref.load %arg1[%c88] : memref<128xf32, #tpu.memory_space<smem>>
    %334 = vector.broadcast %333 : f32 to vector<8x128xf32>
    %335 = arith.mulf %275, %334 : vector<8x128xf32>
    %c92 = arith.constant 92 : index
    %336 = memref.load %arg1[%c92] : memref<128xf32, #tpu.memory_space<smem>>
    %337 = vector.broadcast %336 : f32 to vector<8x128xf32>
    %338 = arith.mulf %294, %337 : vector<8x128xf32>
    %339 = arith.addf %335, %338 : vector<8x128xf32>
    %c96 = arith.constant 96 : index
    %340 = memref.load %arg1[%c96] : memref<128xf32, #tpu.memory_space<smem>>
    %341 = vector.broadcast %340 : f32 to vector<8x128xf32>
    %342 = arith.mulf %313, %341 : vector<8x128xf32>
    %343 = arith.addf %339, %342 : vector<8x128xf32>
    %c100 = arith.constant 100 : index
    %344 = memref.load %arg1[%c100] : memref<128xf32, #tpu.memory_space<smem>>
    %345 = vector.broadcast %344 : f32 to vector<8x128xf32>
    %346 = arith.mulf %332, %345 : vector<8x128xf32>
    %347 = arith.addf %343, %346 : vector<8x128xf32>
    %c104 = arith.constant 104 : index
    %348 = memref.load %arg1[%c104] : memref<128xf32, #tpu.memory_space<smem>>
    %349 = vector.broadcast %348 : f32 to vector<8x128xf32>
    %350 = arith.addf %347, %349 : vector<8x128xf32>
    %351 = math.tanh %350 : vector<8x128xf32>
    %c89 = arith.constant 89 : index
    %352 = memref.load %arg1[%c89] : memref<128xf32, #tpu.memory_space<smem>>
    %353 = vector.broadcast %352 : f32 to vector<8x128xf32>
    %354 = arith.mulf %275, %353 : vector<8x128xf32>
    %c93 = arith.constant 93 : index
    %355 = memref.load %arg1[%c93] : memref<128xf32, #tpu.memory_space<smem>>
    %356 = vector.broadcast %355 : f32 to vector<8x128xf32>
    %357 = arith.mulf %294, %356 : vector<8x128xf32>
    %358 = arith.addf %354, %357 : vector<8x128xf32>
    %c97 = arith.constant 97 : index
    %359 = memref.load %arg1[%c97] : memref<128xf32, #tpu.memory_space<smem>>
    %360 = vector.broadcast %359 : f32 to vector<8x128xf32>
    %361 = arith.mulf %313, %360 : vector<8x128xf32>
    %362 = arith.addf %358, %361 : vector<8x128xf32>
    %c101 = arith.constant 101 : index
    %363 = memref.load %arg1[%c101] : memref<128xf32, #tpu.memory_space<smem>>
    %364 = vector.broadcast %363 : f32 to vector<8x128xf32>
    %365 = arith.mulf %332, %364 : vector<8x128xf32>
    %366 = arith.addf %362, %365 : vector<8x128xf32>
    %c105 = arith.constant 105 : index
    %367 = memref.load %arg1[%c105] : memref<128xf32, #tpu.memory_space<smem>>
    %368 = vector.broadcast %367 : f32 to vector<8x128xf32>
    %369 = arith.addf %366, %368 : vector<8x128xf32>
    %370 = math.tanh %369 : vector<8x128xf32>
    %c90 = arith.constant 90 : index
    %371 = memref.load %arg1[%c90] : memref<128xf32, #tpu.memory_space<smem>>
    %372 = vector.broadcast %371 : f32 to vector<8x128xf32>
    %373 = arith.mulf %275, %372 : vector<8x128xf32>
    %c94 = arith.constant 94 : index
    %374 = memref.load %arg1[%c94] : memref<128xf32, #tpu.memory_space<smem>>
    %375 = vector.broadcast %374 : f32 to vector<8x128xf32>
    %376 = arith.mulf %294, %375 : vector<8x128xf32>
    %377 = arith.addf %373, %376 : vector<8x128xf32>
    %c98 = arith.constant 98 : index
    %378 = memref.load %arg1[%c98] : memref<128xf32, #tpu.memory_space<smem>>
    %379 = vector.broadcast %378 : f32 to vector<8x128xf32>
    %380 = arith.mulf %313, %379 : vector<8x128xf32>
    %381 = arith.addf %377, %380 : vector<8x128xf32>
    %c102 = arith.constant 102 : index
    %382 = memref.load %arg1[%c102] : memref<128xf32, #tpu.memory_space<smem>>
    %383 = vector.broadcast %382 : f32 to vector<8x128xf32>
    %384 = arith.mulf %332, %383 : vector<8x128xf32>
    %385 = arith.addf %381, %384 : vector<8x128xf32>
    %c106 = arith.constant 106 : index
    %386 = memref.load %arg1[%c106] : memref<128xf32, #tpu.memory_space<smem>>
    %387 = vector.broadcast %386 : f32 to vector<8x128xf32>
    %388 = arith.addf %385, %387 : vector<8x128xf32>
    %389 = math.tanh %388 : vector<8x128xf32>
    %c91 = arith.constant 91 : index
    %390 = memref.load %arg1[%c91] : memref<128xf32, #tpu.memory_space<smem>>
    %391 = vector.broadcast %390 : f32 to vector<8x128xf32>
    %392 = arith.mulf %275, %391 : vector<8x128xf32>
    %c95 = arith.constant 95 : index
    %393 = memref.load %arg1[%c95] : memref<128xf32, #tpu.memory_space<smem>>
    %394 = vector.broadcast %393 : f32 to vector<8x128xf32>
    %395 = arith.mulf %294, %394 : vector<8x128xf32>
    %396 = arith.addf %392, %395 : vector<8x128xf32>
    %c99 = arith.constant 99 : index
    %397 = memref.load %arg1[%c99] : memref<128xf32, #tpu.memory_space<smem>>
    %398 = vector.broadcast %397 : f32 to vector<8x128xf32>
    %399 = arith.mulf %313, %398 : vector<8x128xf32>
    %400 = arith.addf %396, %399 : vector<8x128xf32>
    %c103 = arith.constant 103 : index
    %401 = memref.load %arg1[%c103] : memref<128xf32, #tpu.memory_space<smem>>
    %402 = vector.broadcast %401 : f32 to vector<8x128xf32>
    %403 = arith.mulf %332, %402 : vector<8x128xf32>
    %404 = arith.addf %400, %403 : vector<8x128xf32>
    %c107 = arith.constant 107 : index
    %405 = memref.load %arg1[%c107] : memref<128xf32, #tpu.memory_space<smem>>
    %406 = vector.broadcast %405 : f32 to vector<8x128xf32>
    %407 = arith.addf %404, %406 : vector<8x128xf32>
    %408 = math.tanh %407 : vector<8x128xf32>
    %c108 = arith.constant 108 : index
    %409 = memref.load %arg1[%c108] : memref<128xf32, #tpu.memory_space<smem>>
    %410 = vector.broadcast %409 : f32 to vector<8x128xf32>
    %411 = arith.mulf %351, %410 : vector<8x128xf32>
    %c109 = arith.constant 109 : index
    %412 = memref.load %arg1[%c109] : memref<128xf32, #tpu.memory_space<smem>>
    %413 = vector.broadcast %412 : f32 to vector<8x128xf32>
    %414 = arith.mulf %370, %413 : vector<8x128xf32>
    %415 = arith.addf %411, %414 : vector<8x128xf32>
    %c110 = arith.constant 110 : index
    %416 = memref.load %arg1[%c110] : memref<128xf32, #tpu.memory_space<smem>>
    %417 = vector.broadcast %416 : f32 to vector<8x128xf32>
    %418 = arith.mulf %389, %417 : vector<8x128xf32>
    %419 = arith.addf %415, %418 : vector<8x128xf32>
    %c111 = arith.constant 111 : index
    %420 = memref.load %arg1[%c111] : memref<128xf32, #tpu.memory_space<smem>>
    %421 = vector.broadcast %420 : f32 to vector<8x128xf32>
    %422 = arith.mulf %408, %421 : vector<8x128xf32>
    %423 = arith.addf %419, %422 : vector<8x128xf32>
    %c112 = arith.constant 112 : index
    %424 = memref.load %arg1[%c112] : memref<128xf32, #tpu.memory_space<smem>>
    %425 = vector.broadcast %424 : f32 to vector<8x128xf32>
    %426 = arith.addf %423, %425 : vector<8x128xf32>
    %c0_2 = arith.constant 0 : index
    %c0_3 = arith.constant 0 : index
    %427 = vector.load %arg3[%c0_2, %c0_3] : memref<8x128xf32, #tpu.memory_space<vmem>>, vector<8x128xf32>
    tpu.vector_store %arg3[%c0_2, %c0_3], %426 {strides = array<i32>} : memref<8x128xf32, #tpu.memory_space<vmem>>, vector<8x128xf32>,
    return
  }
  func.func @transform_0(%arg0: i32) -> i32 {
    %c0_i32 = arith.constant 0 : i32
    %c0_i32_0 = arith.constant 0 : i32
    return %c0_i32 : i32
  }
  func.func @transform_1(%arg0: i32) -> (i32, i32) {
    %c0_i32 = arith.constant 0 : i32
    %c0_i32_0 = arith.constant 0 : i32
    return %arg0, %c0_i32 : i32, i32
  }
  func.func @transform_2(%arg0: i32) -> (i32, i32) {
    %c0_i32 = arith.constant 0 : i32
    %c0_i32_0 = arith.constant 0 : i32
    return %arg0, %c0_i32 : i32, i32
  }
}

</mosaic_0001>

<bundles_post_ra>
// kernel: neural_network2_forward.1
= control target key start
LH: loop header
LB: loop body
LE: loop exit
PB: predicated region body
PF: predicated region fallthrough
CT: control target
= control target key end

     0   :  { %7 = vsyncpa [#allocation3], 0  ;;  %s933_s0 = inlined_call_operand.vmem [shape: f32[128], index: 0, kind: input, shape index: {}]   ;;  %s934_s1 = inlined_call_operand.vmem [shape: f32[8,128], index: 1, kind: input, shape index: {}]   ;;  %s935_s2 = inlined_call_operand.vmem [shape: f32[8,128], index: 2, kind: output, shape index: {}]  }
   0x1   :  { %s14_s11 = sshll.u32 %s933_s0, 4  ;;  %s15_s11 = int_to_ptr.vmem [resolvable:$true] %s14_s11 }
   0x2   :  { %s618_s12 = scalar_lea.vmem %s15_s11, 16  ;;  %p623_p1 = scmp.lt.s32.totalorder %s15_s11, %s15_s11 }
   0x3   :  { %p619_p0 = scmp.ne.s32.totalorder %s15_s11, %s618_s12  ;;  %p624_p2 = scmp.lt.s32.totalorder %s618_s12, %s618_s12 }
   0x5   :  { %p625_p3 = por %p624_p2, %p623_p1 }
   0x7   :  { %p626_p4 = pnand %p625_p3, %p619_p0 }
   0x9   :  { %629 = shalt.err (!%p626_p4)
}
   0xa   :  { %s632_s13 = smov [#allocation2]  }
   0xb   :  { %17 = dma.vmem_to_smem %s15_s11, 16, %s632_s13, [#allocation3]  }
   0xc   :  { %630 = dma.done.wait [#allocation3], 16  }
   0xd   :  { %631 = vsyncadd [#allocation3], 4294967280 }
   0xe   :  { %23 = sfence }
   0xf   :  { %s25_s14 = sld [smem:[#allocation2]]  ;;  %v24_v0 = vld [vmem:[%s934_s1] sm:$0xff] }
  0x10   :  { %s457_s15 = sld [smem:[#allocation2 + $0x4]] }
  0x11   :  { %s458_s16 = sld [smem:[#allocation2 + $0x1]] }
  0x12   :  { %s459_s17 = sld [smem:[#allocation2 + $0x5]] }
  0x13   :  { %s460_s0 = sld [smem:[#allocation2 + $0x2]] }
  0x14   :  { %s461_s20 = sld [smem:[#allocation2 + $0x6]] }
  0x15   :  { %v26_v1 = vstv %s25_s14  ;;  %s462_s21 = sld [smem:[#allocation2 + $0x3]] }
  0x16   :  { %v27_v2 = vmul.f32 %v26_v1, %v24_v0  ;;  %v29_v3 = vstv %s457_s15  ;;  %s463_s22 = sld [smem:[#allocation2 + $0x7]] }
  0x17   :  { %v33_v4 = vstv %s458_s16  ;;  %s654_s23 = sld [smem:[#allocation2 + $0x8]] }
  0x18   :  { %v30_v5 = vadd.f32 %v29_v3, %v27_v2  ;;  %v34_v6 = vmul.f32 %v33_v4, %v24_v0  ;;  %v36_v7 = vstv %s459_s17  ;;  %s656_s24 = sld [smem:[#allocation2 + $0xc]] }
  0x19   :  { %v40_v8 = vstv %s460_s0  ;;  %s658_s25 = sld [smem:[#allocation2 + $0x10]] }
  0x1a   :  { %570 = vtanh.f32 %v30_v5  ;;  %v37_v9 = vadd.f32 %v36_v7, %v34_v6  ;;  %v41_v10 = vmul.f32 %v40_v8, %v24_v0  ;;  %v43_v11 = vstv %s461_s20  ;;  %s660_s1 = sld [smem:[#allocation2 + $0x14]] }
  0x1b   :  { %v47_v12 = vstv %s462_s21  ;;  %s662_s26 = sld [smem:[#allocation2 + $0x18]] }
  0x1c   :  { %572 = vtanh.f32 %v37_v9  ;;  %v44_v13 = vadd.f32 %v43_v11, %v41_v10  ;;  %v48_v14 = vmul.f32 %v47_v12, %v24_v0  ;;  %v50_v15 = vstv %s463_s22  ;;  %s469_s27 = sld [smem:[#allocation2 + $0x9]] }
  0x1d   :  { %s664_s28 = sld [smem:[#allocation2 + $0xd]]  ;;  %v54_v17 = vstv %s654_s23 }
  0x1e   :  { %574 = vtanh.f32 %v44_v13  ;;  %v51_v16 = vadd.f32 %v50_v15, %v48_v14  ;;  %s666_s29 = sld [smem:[#allocation2 + $0x11]]  ;;  %v57_v20 = vstv %s656_s24 }
  0x1f   :  { %s668_s30 = sld [smem:[#allocation2 + $0x15]]  ;;  %v61_v24 = vstv %s658_s25 }
  0x20   :  { %576 = vtanh.f32 %v51_v16  ;;  %s670_s3 = sld [smem:[#allocation2 + $0x19]]  ;;  %v65_v28 = vstv %s660_s1 }
  0x21   :  { %s474_s4 = sld [smem:[#allocation2 + $0xa]]  ;;  %v69_v29 = vstv %s662_s26 }
  0x22   :  { %s475_s5 = sld [smem:[#allocation2 + $0xe]]  ;;  %v73_v18 = vstv %s469_s27 }
  0x23   :  { %s672_s6 = sld [smem:[#allocation2 + $0x12]]  ;;  %v76_v21 = vstv %s664_s28 }
  0x24   :  { %s674_s7 = sld [smem:[#allocation2 + $0x16]]  ;;  %v80_v30 = vstv %s666_s29 }
  0x25   :  { %s677_s8 = sld [smem:[#allocation2 + $0x1a]]  ;;  %v84_v37 = vstv %s668_s30 }
  0x26   :  { %s679_s9 = sld [smem:[#allocation2 + $0xb]]  ;;  %v88_v38 = vstv %s670_s3 }
  0x27   :  { %v571_v19 = vpop.eup %570  ;;  %v92_v22 = vstv %s474_s4  ;;  %s683_s10 = sld [smem:[#allocation2 + $0xf]] }
  0x28   :  { %v55_v23 = vmul.f32 %v571_v19, %v54_v17  ;;  %v74_v25 = vmul.f32 %v571_v19, %v73_v18  ;;  %v95_v26 = vstv %s475_s5  ;;  %s686_s11 = sld [smem:[#allocation2 + $0x13]]  ;;  %v93_v31 = vmul.f32 %v571_v19, %v92_v22 }
  0x29   :  { %v573_v27 = vpop.eup %572  ;;  %s691_s12 = sld [smem:[#allocation2 + $0x17]]  ;;  %v99_v35 = vstv %s672_s6 }
  0x2a   :  { %v58_v32 = vmul.f32 %v573_v27, %v57_v20  ;;  %v77_v33 = vmul.f32 %v573_v27, %v76_v21  ;;  %v96_v34 = vmul.f32 %v573_v27, %v95_v26  ;;  %v103_v39 = vstv %s674_s7  ;;  %s698_s13 = sld [smem:[#allocation2 + $0x1b]] }
  0x2b   :  { %v575_v36 = vpop.eup %574  ;;  %v107_v40 = vstv %s677_s8  ;;  %s702_s14 = sld [smem:[#allocation2 + $0x1c]] }
  0x2c   :  { %v59_v41 = vadd.f32 %v58_v32, %v55_v23  ;;  %v62_v42 = vmul.f32 %v575_v36, %v61_v24  ;;  %v78_v43 = vadd.f32 %v77_v33, %v74_v25  ;;  %v81_v44 = vmul.f32 %v575_v36, %v80_v30  ;;  %s704_s15 = sld [smem:[#allocation2 + $0x20]] }
  0x2d   :  { %v577_v45 = vpop.eup %576  ;;  %v97_v46 = vadd.f32 %v96_v34, %v93_v31  ;;  %v100_v47 = vmul.f32 %v575_v36, %v99_v35  ;;  %v111_v48 = vstv %s679_s9  ;;  %v114_v49 = vstv %s683_s10  ;;  %s706_s16 = sld [smem:[#allocation2 + $0x24]] }
  0x2e   :  { %v63_v50 = vadd.f32 %v62_v42, %v59_v41  ;;  %v66_v51 = vmul.f32 %v577_v45, %v65_v28  ;;  %v82_v52 = vadd.f32 %v81_v44, %v78_v43  ;;  %v85_v53 = vmul.f32 %v577_v45, %v84_v37  ;;  %s710_s17 = sld [smem:[#allocation2 + $0x28]] }
  0x2f   :  { %v101_v54 = vadd.f32 %v100_v47, %v97_v46  ;;  %v104_v55 = vmul.f32 %v577_v45, %v103_v39  ;;  %v112_v56 = vmul.f32 %v571_v19, %v111_v48  ;;  %v115_v57 = vmul.f32 %v573_v27, %v114_v49  ;;  %s712_s18 = sld [smem:[#allocation2 + $0x2c]] }
  0x30   :  { %v67_v58 = vadd.f32 %v66_v51, %v63_v50  ;;  %v86_v59 = vadd.f32 %v85_v53, %v82_v52  ;;  %v118_v60 = vstv %s686_s11  ;;  %v122_v61 = vstv %s691_s12  ;;  %s714_s19 = sld [smem:[#allocation2 + $0x1d]] }
  0x31   :  { %v105_v62 = vadd.f32 %v104_v55, %v101_v54  ;;  %v116_v63 = vadd.f32 %v115_v57, %v112_v56  ;;  %v119_v0 = vmul.f32 %v575_v36, %v118_v60  ;;  %v123_v1 = vmul.f32 %v577_v45, %v122_v61  ;;  %s716_s0 = sld [smem:[#allocation2 + $0x21]] }
  0x32   :  { %v70_v2 = vadd.f32 %v69_v29, %v67_v58  ;;  %v89_v3 = vadd.f32 %v88_v38, %v86_v59  ;;  %v126_v6 = vstv %s698_s13  ;;  %s719_s20 = sld [smem:[#allocation2 + $0x25]]  ;;  %v130_v9 = vstv %s702_s14 }
  0x33   :  { %v108_v4 = vadd.f32 %v107_v40, %v105_v62  ;;  %v120_v5 = vadd.f32 %v119_v0, %v116_v63  ;;  %s721_s21 = sld [smem:[#allocation2 + $0x29]]  ;;  %v133_v10 = vstv %s704_s15  ;;  %v137_v11 = vstv %s706_s16 }
  0x34   :  { %578 = vtanh.f32 %v70_v2  ;;  %s723_s22 = sld [smem:[#allocation2 + $0x1e]]  ;;  %v141_v12 = vstv %s710_s17 }
  0x35   :  { %580 = vtanh.f32 %v89_v3  ;;  %v124_v7 = vadd.f32 %v123_v1, %v120_v5  ;;  %s725_s23 = sld [smem:[#allocation2 + $0x22]]  ;;  %v145_v43 = vstv %s712_s18 }
  0x36   :  { %582 = vtanh.f32 %v108_v4  ;;  %s727_s24 = sld [smem:[#allocation2 + $0x26]]  ;;  %v149_v13 = vstv %s714_s19 }
  0x37   :  { %v127_v8 = vadd.f32 %v126_v6, %v124_v7  ;;  %s729_s25 = sld [smem:[#allocation2 + $0x2a]]  ;;  %v152_v15 = vstv %s716_s0 }
  0x38   :  { %s499_s1 = sld [smem:[#allocation2 + $0x1f]]  ;;  %v156_v16 = vstv %s719_s20 }
  0x39   :  { %584 = vtanh.f32 %v127_v8  ;;  %s500_s26 = sld [smem:[#allocation2 + $0x23]]  ;;  %v160_v20 = vstv %s721_s21 }
  0x3a   :  { %s731_s27 = sld [smem:[#allocation2 + $0x27]]  ;;  %v168_v14 = vstv %s723_s22 }
  0x3b   :  { %s733_s28 = sld [smem:[#allocation2 + $0x2d]]  ;;  %v171_v17 = vstv %s725_s23 }
  0x3c   :  { %s737_s29 = sld [smem:[#allocation2 + $0x2b]]  ;;  %v175_v21 = vstv %s727_s24 }
  0x3d   :  { %s746_s30 = sld [smem:[#allocation2 + $0x2e]]  ;;  %v179_v22 = vstv %s729_s25 }
  0x3e   :  { %v187_v18 = vstv %s499_s1  ;;  %s751_s3 = sld [smem:[#allocation2 + $0x2f]] }
  0x3f   :  { %v190_v23 = vstv %s500_s26  ;;  %s753_s4 = sld [smem:[#allocation2 + $0x30]] }
  0x40   :  { %v194_v37 = vstv %s731_s27  ;;  %s756_s5 = sld [smem:[#allocation2 + $0x34]] }
  0x41   :  { %v579_v19 = vpop.eup %578  ;;  %s758_s6 = sld [smem:[#allocation2 + $0x38]]  ;;  %v164_v44 = vstv %s733_s28 }
  0x42   :  { %v581_v24 = vpop.eup %580  ;;  %v131_v25 = vmul.f32 %v579_v19, %v130_v9  ;;  %v150_v26 = vmul.f32 %v579_v19, %v149_v13  ;;  %v169_v27 = vmul.f32 %v579_v19, %v168_v14  ;;  %v188_v28 = vmul.f32 %v579_v19, %v187_v18  ;;  %s763_s7 = sld [smem:[#allocation2 + $0x3c]] }
  0x43   :  { %v583_v29 = vpop.eup %582  ;;  %v134_v30 = vmul.f32 %v581_v24, %v133_v10  ;;  %v153_v31 = vmul.f32 %v581_v24, %v152_v15  ;;  %v172_v32 = vmul.f32 %v581_v24, %v171_v17  ;;  %v191_v33 = vmul.f32 %v581_v24, %v190_v23  ;;  %s765_s8 = sld [smem:[#allocation2 + $0x31]] }
  0x44   :  { %v138_v34 = vmul.f32 %v583_v29, %v137_v11  ;;  %v157_v35 = vmul.f32 %v583_v29, %v156_v16  ;;  %v176_v36 = vmul.f32 %v583_v29, %v175_v21  ;;  %v195_v45 = vmul.f32 %v583_v29, %v194_v37  ;;  %s767_s9 = sld [smem:[#allocation2 + $0x35]] }
  0x45   :  { %v135_v38 = vadd.f32 %v134_v30, %v131_v25  ;;  %v154_v39 = vadd.f32 %v153_v31, %v150_v26  ;;  %v173_v40 = vadd.f32 %v172_v32, %v169_v27  ;;  %v192_v41 = vadd.f32 %v191_v33, %v188_v28  ;;  %s771_s10 = sld [smem:[#allocation2 + $0x39]] }
  0x46   :  { %v585_v42 = vpop.eup %584  ;;  %v198_v46 = vstv %s737_s29  ;;  %v183_v57 = vstv %s746_s30  ;;  %v202_v58 = vstv %s751_s3  ;;  %s773_s11 = sld [smem:[#allocation2 + $0x3d]]  ;;  %v206_v1 = vstv %s753_s4 }
  0x47   :  { %v139_v47 = vadd.f32 %v138_v34, %v135_v38  ;;  %v142_v48 = vmul.f32 %v585_v42, %v141_v12  ;;  %v158_v49 = vadd.f32 %v157_v35, %v154_v39  ;;  %v161_v50 = vmul.f32 %v585_v42, %v160_v20  ;;  %s775_s12 = sld [smem:[#allocation2 + $0x32]] }
  0x48   :  { %v177_v51 = vadd.f32 %v176_v36, %v173_v40  ;;  %v180_v52 = vmul.f32 %v585_v42, %v179_v22  ;;  %v196_v53 = vadd.f32 %v195_v45, %v192_v41  ;;  %v199_v54 = vmul.f32 %v585_v42, %v198_v46  ;;  %s777_s13 = sld [smem:[#allocation2 + $0x36]] }
  0x49   :  { %v143_v55 = vadd.f32 %v142_v48, %v139_v47  ;;  %v162_v56 = vadd.f32 %v161_v50, %v158_v49  ;;  %s779_s14 = sld [smem:[#allocation2 + $0x3a]]  ;;  %v209_v2 = vstv %s756_s5  ;;  %v213_v3 = vstv %s758_s6 }
  0x4a   :  { %v181_v59 = vadd.f32 %v180_v52, %v177_v51  ;;  %v200_v60 = vadd.f32 %v199_v54, %v196_v53  ;;  %s781_s15 = sld [smem:[#allocation2 + $0x3e]]  ;;  %v217_v4 = vstv %s763_s7  ;;  %v225_v5 = vstv %s765_s8 }
  0x4b   :  { %v146_v61 = vadd.f32 %v145_v43, %v143_v55  ;;  %v165_v62 = vadd.f32 %v164_v44, %v162_v56  ;;  %s519_s16 = sld [smem:[#allocation2 + $0x33]]  ;;  %v228_v6 = vstv %s767_s9  ;;  %v232_v9 = vstv %s771_s10 }
  0x4c   :  { %v184_v63 = vadd.f32 %v183_v57, %v181_v59  ;;  %v203_v0 = vadd.f32 %v202_v58, %v200_v60  ;;  %s783_s17 = sld [smem:[#allocation2 + $0x37]]  ;;  %v236_v10 = vstv %s773_s11 }
  0x4d   :  { %586 = vtanh.f32 %v146_v61  ;;  %s785_s18 = sld [smem:[#allocation2 + $0x3b]]  ;;  %v244_v7 = vstv %s775_s12 }
  0x4e   :  { %588 = vtanh.f32 %v165_v62  ;;  %s787_s19 = sld [smem:[#allocation2 + $0x3f]]  ;;  %v247_v11 = vstv %s777_s13 }
  0x4f   :  { %590 = vtanh.f32 %v184_v63  ;;  %s793_s0 = sld [smem:[#allocation2 + $0x40]]  ;;  %v251_v14 = vstv %s779_s14 }
  0x50   :  { %592 = vtanh.f32 %v203_v0  ;;  %s797_s20 = sld [smem:[#allocation2 + $0x41]]  ;;  %v255_v15 = vstv %s781_s15 }
  0x51   :  { %v263_v8 = vstv %s519_s16  ;;  %s803_s21 = sld [smem:[#allocation2 + $0x42]] }
  0x52   :  { %v266_v12 = vstv %s783_s17  ;;  %s810_s22 = sld [smem:[#allocation2 + $0x43]] }
  0x53   :  { %v270_v16 = vstv %s785_s18  ;;  %s812_s23 = sld [smem:[#allocation2 + $0x44]] }
  0x54   :  { %v274_v17 = vstv %s787_s19  ;;  %s814_s24 = sld [smem:[#allocation2 + $0x48]] }
  0x55   :  { %s816_s25 = sld [smem:[#allocation2 + $0x4c]]  ;;  %v221_v43 = vstv %s793_s0 }
  0x56   :  { %s818_s1 = sld [smem:[#allocation2 + $0x50]]  ;;  %v240_v44 = vstv %s797_s20 }
  0x57   :  { %s820_s26 = sld [smem:[#allocation2 + $0x45]]  ;;  %v259_v49 = vstv %s803_s21 }
  0x58   :  { %s824_s27 = sld [smem:[#allocation2 + $0x49]]  ;;  %v278_v50 = vstv %s810_s22 }
  0x59   :  { %s828_s28 = sld [smem:[#allocation2 + $0x4d]]  ;;  %v282_v57 = vstv %s812_s23 }
  0x5a   :  { %v587_v13 = vpop.eup %586  ;;  %s830_s29 = sld [smem:[#allocation2 + $0x51]]  ;;  %v285_v58 = vstv %s814_s24 }
  0x5b   :  { %v589_v18 = vpop.eup %588  ;;  %v207_v19 = vmul.f32 %v587_v13, %v206_v1  ;;  %v226_v20 = vmul.f32 %v587_v13, %v225_v5  ;;  %v245_v21 = vmul.f32 %v587_v13, %v244_v7  ;;  %v264_v22 = vmul.f32 %v587_v13, %v263_v8  ;;  %s832_s30 = sld [smem:[#allocation2 + $0x46]] }
  0x5c   :  { %v591_v23 = vpop.eup %590  ;;  %v210_v24 = vmul.f32 %v589_v18, %v209_v2  ;;  %v229_v25 = vmul.f32 %v589_v18, %v228_v6  ;;  %v248_v26 = vmul.f32 %v589_v18, %v247_v11  ;;  %v267_v27 = vmul.f32 %v589_v18, %v266_v12  ;;  %s834_s3 = sld [smem:[#allocation2 + $0x4a]] }
  0x5d   :  { %v593_v28 = vpop.eup %592  ;;  %v214_v29 = vmul.f32 %v591_v23, %v213_v3  ;;  %v233_v30 = vmul.f32 %v591_v23, %v232_v9  ;;  %v252_v31 = vmul.f32 %v591_v23, %v251_v14  ;;  %v271_v32 = vmul.f32 %v591_v23, %v270_v16  ;;  %s836_s4 = sld [smem:[#allocation2 + $0x4e]] }
  0x5e   :  { %v211_v33 = vadd.f32 %v210_v24, %v207_v19  ;;  %v218_v34 = vmul.f32 %v593_v28, %v217_v4  ;;  %v230_v35 = vadd.f32 %v229_v25, %v226_v20  ;;  %v237_v36 = vmul.f32 %v593_v28, %v236_v10  ;;  %s838_s5 = sld [smem:[#allocation2 + $0x52]] }
  0x5f   :  { %v249_v37 = vadd.f32 %v248_v26, %v245_v21  ;;  %v256_v38 = vmul.f32 %v593_v28, %v255_v15  ;;  %v268_v39 = vadd.f32 %v267_v27, %v264_v22  ;;  %v275_v40 = vmul.f32 %v593_v28, %v274_v17  ;;  %s539_s6 = sld [smem:[#allocation2 + $0x47]] }
  0x60   :  { %v215_v41 = vadd.f32 %v214_v29, %v211_v33  ;;  %v234_v42 = vadd.f32 %v233_v30, %v230_v35  ;;  %s840_s7 = sld [smem:[#allocation2 + $0x4b]]  ;;  %v289_v59 = vstv %s816_s25  ;;  %v293_v60 = vstv %s818_s1 }
  0x61   :  { %v253_v45 = vadd.f32 %v252_v31, %v249_v37  ;;  %v272_v46 = vadd.f32 %v271_v32, %v268_v39  ;;  %s842_s8 = sld [smem:[#allocation2 + $0x4f]]  ;;  %v301_v61 = vstv %s820_s26  ;;  %v304_v62 = vstv %s824_s27 }
  0x62   :  { %v219_v47 = vadd.f32 %v218_v34, %v215_v41  ;;  %v238_v48 = vadd.f32 %v237_v36, %v234_v42  ;;  %s844_s9 = sld [smem:[#allocation2 + $0x53]]  ;;  %v320_v63 = vstv %s832_s30  ;;  %v308_v1 = vstv %s828_s28 }
  0x63   :  { %v257_v51 = vadd.f32 %v256_v38, %v253_v45  ;;  %v276_v52 = vadd.f32 %v275_v40, %v272_v46  ;;  %s850_s10 = sld [smem:[#allocation2 + $0x54]]  ;;  %v312_v2 = vstv %s830_s29  ;;  %v323_v3 = vstv %s834_s3 }
  0x64   :  { %v222_v53 = vadd.f32 %v221_v43, %v219_v47  ;;  %v241_v54 = vadd.f32 %v240_v44, %v238_v48  ;;  %s854_s11 = sld [smem:[#allocation2 + $0x55]]  ;;  %v327_v6 = vstv %s836_s4  ;;  %v331_v7 = vstv %s838_s5 }
  0x65   :  { %v260_v55 = vadd.f32 %v259_v49, %v257_v51  ;;  %v279_v56 = vadd.f32 %v278_v50, %v276_v52  ;;  %v339_v0 = vstv %s539_s6  ;;  %s860_s12 = sld [smem:[#allocation2 + $0x56]] }
  0x66   :  { %594 = vtanh.f32 %v222_v53  ;;  %v342_v4 = vstv %s840_s7  ;;  %s867_s13 = sld [smem:[#allocation2 + $0x57]] }
  0x67   :  { %596 = vtanh.f32 %v241_v54  ;;  %v346_v8 = vstv %s842_s8  ;;  %s869_s14 = sld [smem:[#allocation2 + $0x58]] }
  0x68   :  { %598 = vtanh.f32 %v260_v55  ;;  %v350_v9 = vstv %s844_s9  ;;  %s871_s15 = sld [smem:[#allocation2 + $0x5c]] }
  0x69   :  { %600 = vtanh.f32 %v279_v56  ;;  %s873_s16 = sld [smem:[#allocation2 + $0x60]]  ;;  %v297_v35 = vstv %s850_s10 }
  0x6a   :  { %s875_s17 = sld [smem:[#allocation2 + $0x64]]  ;;  %v316_v36 = vstv %s854_s11 }
  0x6b   :  { %s877_s18 = sld [smem:[#allocation2 + $0x59]]  ;;  %v335_v41 = vstv %s860_s12 }
  0x6c   :  { %s881_s19 = sld [smem:[#allocation2 + $0x5d]]  ;;  %v354_v42 = vstv %s867_s13 }
  0x6d   :  { %s885_s0 = sld [smem:[#allocation2 + $0x61]]  ;;  %v358_v49 = vstv %s869_s14 }
  0x6e   :  { %s887_s20 = sld [smem:[#allocation2 + $0x65]]  ;;  %v361_v50 = vstv %s871_s15 }
  0x6f   :  { %s889_s21 = sld [smem:[#allocation2 + $0x5a]]  ;;  %v365_v51 = vstv %s873_s16 }
  0x70   :  { %s891_s22 = sld [smem:[#allocation2 + $0x5e]]  ;;  %v369_v52 = vstv %s875_s17 }
  0x71   :  { %s893_s23 = sld [smem:[#allocation2 + $0x62]]  ;;  %v377_v53 = vstv %s877_s18 }
  0x72   :  { %s895_s24 = sld [smem:[#allocation2 + $0x66]]  ;;  %v380_v54 = vstv %s881_s19 }
  0x73   :  { %v595_v5 = vpop.eup %594  ;;  %s559_s25 = sld [smem:[#allocation2 + $0x5b]] }
  0x74   :  { %v597_v10 = vpop.eup %596  ;;  %v283_v11 = vmul.f32 %v595_v5, %v282_v57  ;;  %v302_v12 = vmul.f32 %v595_v5, %v301_v61  ;;  %v321_v13 = vmul.f32 %v595_v5, %v320_v63  ;;  %v340_v14 = vmul.f32 %v595_v5, %v339_v0  ;;  %s897_s1 = sld [smem:[#allocation2 + $0x5f]] }
  0x75   :  { %v599_v15 = vpop.eup %598  ;;  %v286_v16 = vmul.f32 %v597_v10, %v285_v58  ;;  %v305_v17 = vmul.f32 %v597_v10, %v304_v62  ;;  %v324_v18 = vmul.f32 %v597_v10, %v323_v3  ;;  %v343_v19 = vmul.f32 %v597_v10, %v342_v4  ;;  %s899_s26 = sld [smem:[#allocation2 + $0x63]] }
  0x76   :  { %v601_v20 = vpop.eup %600  ;;  %v290_v21 = vmul.f32 %v599_v15, %v289_v59  ;;  %v309_v22 = vmul.f32 %v599_v15, %v308_v1  ;;  %v328_v23 = vmul.f32 %v599_v15, %v327_v6  ;;  %v347_v24 = vmul.f32 %v599_v15, %v346_v8  ;;  %s901_s27 = sld [smem:[#allocation2 + $0x67]] }
  0x77   :  { %v287_v25 = vadd.f32 %v286_v16, %v283_v11  ;;  %v294_v26 = vmul.f32 %v601_v20, %v293_v60  ;;  %v306_v27 = vadd.f32 %v305_v17, %v302_v12  ;;  %v313_v28 = vmul.f32 %v601_v20, %v312_v2  ;;  %s907_s28 = sld [smem:[#allocation2 + $0x68]] }
  0x78   :  { %v325_v29 = vadd.f32 %v324_v18, %v321_v13  ;;  %v332_v30 = vmul.f32 %v601_v20, %v331_v7  ;;  %v344_v31 = vadd.f32 %v343_v19, %v340_v14  ;;  %v351_v32 = vmul.f32 %v601_v20, %v350_v9  ;;  %s911_s29 = sld [smem:[#allocation2 + $0x69]] }
  0x79   :  { %v291_v33 = vadd.f32 %v290_v21, %v287_v25  ;;  %v310_v34 = vadd.f32 %v309_v22, %v306_v27  ;;  %v396_v55 = vstv %s889_s21  ;;  %v415_v56 = vstv %s559_s25  ;;  %s917_s30 = sld [smem:[#allocation2 + $0x6a]] }
  0x7a   :  { %v329_v37 = vadd.f32 %v328_v23, %v325_v29  ;;  %v348_v38 = vadd.f32 %v347_v24, %v344_v31  ;;  %v384_v57 = vstv %s885_s0  ;;  %v388_v58 = vstv %s887_s20  ;;  %s924_s3 = sld [smem:[#allocation2 + $0x6b]] }
  0x7b   :  { %v295_v39 = vadd.f32 %v294_v26, %v291_v33  ;;  %v314_v40 = vadd.f32 %v313_v28, %v310_v34  ;;  %v399_v59 = vstv %s891_s22  ;;  %v418_v60 = vstv %s897_s1  ;;  %s564_s4 = sld [smem:[#allocation2 + $0x6c]] }
  0x7c   :  { %v333_v43 = vadd.f32 %v332_v30, %v329_v37  ;;  %v352_v44 = vadd.f32 %v351_v32, %v348_v38  ;;  %v403_v62 = vstv %s893_s23  ;;  %v407_v63 = vstv %s895_s24  ;;  %s565_s5 = sld [smem:[#allocation2 + $0x6d]] }
  0x7d   :  { %v298_v45 = vadd.f32 %v297_v35, %v295_v39  ;;  %v317_v46 = vadd.f32 %v316_v36, %v314_v40  ;;  %v422_v0 = vstv %s899_s26  ;;  %v426_v1 = vstv %s901_s27  ;;  %s566_s6 = sld [smem:[#allocation2 + $0x6e]] }
  0x7e   :  { %v336_v47 = vadd.f32 %v335_v41, %v333_v43  ;;  %v355_v48 = vadd.f32 %v354_v42, %v352_v44  ;;  %v373_v27 = vstv %s907_s28  ;;  %v392_v28 = vstv %s911_s29  ;;  %s567_s7 = sld [smem:[#allocation2 + $0x6f]] }
  0x7f   :  { %602 = vtanh.f32 %v298_v45  ;;  %v411_v33 = vstv %s917_s30  ;;  %s568_s8 = sld [smem:[#allocation2 + $0x70]] }
  0x80   :  { %604 = vtanh.f32 %v317_v46  ;;  %v430_v34 = vstv %s924_s3 }
  0x81   :  { %606 = vtanh.f32 %v336_v47  ;;  %v434_v41 = vstv %s564_s4 }
  0x82   :  { %608 = vtanh.f32 %v355_v48  ;;  %v437_v42 = vstv %s565_s5 }
  0x83   :  { %v441_v44 = vstv %s566_s6 }
  0x84   :  { %v445_v47 = vstv %s567_s7 }
  0x8c   :  { %v603_v61 = vpop.eup %602 }
  0x8d   :  { %v605_v2 = vpop.eup %604  ;;  %v359_v3 = vmul.f32 %v603_v61, %v358_v49  ;;  %v378_v4 = vmul.f32 %v603_v61, %v377_v53  ;;  %v397_v5 = vmul.f32 %v603_v61, %v396_v55  ;;  %v416_v6 = vmul.f32 %v603_v61, %v415_v56 }
  0x8e   :  { %v607_v7 = vpop.eup %606  ;;  %v362_v8 = vmul.f32 %v605_v2, %v361_v50  ;;  %v381_v9 = vmul.f32 %v605_v2, %v380_v54  ;;  %v400_v10 = vmul.f32 %v605_v2, %v399_v59  ;;  %v419_v11 = vmul.f32 %v605_v2, %v418_v60 }
  0x8f   :  { %v609_v12 = vpop.eup %608  ;;  %v366_v13 = vmul.f32 %v607_v7, %v365_v51  ;;  %v385_v14 = vmul.f32 %v607_v7, %v384_v57  ;;  %v404_v15 = vmul.f32 %v607_v7, %v403_v62  ;;  %v423_v16 = vmul.f32 %v607_v7, %v422_v0 }
  0x90   :  { %v363_v17 = vadd.f32 %v362_v8, %v359_v3  ;;  %v370_v18 = vmul.f32 %v609_v12, %v369_v52  ;;  %v382_v19 = vadd.f32 %v381_v9, %v378_v4  ;;  %v389_v20 = vmul.f32 %v609_v12, %v388_v58 }
  0x91   :  { %v401_v21 = vadd.f32 %v400_v10, %v397_v5  ;;  %v408_v22 = vmul.f32 %v609_v12, %v407_v63  ;;  %v420_v23 = vadd.f32 %v419_v11, %v416_v6  ;;  %v427_v24 = vmul.f32 %v609_v12, %v426_v1 }
  0x92   :  { %v367_v25 = vadd.f32 %v366_v13, %v363_v17  ;;  %v386_v26 = vadd.f32 %v385_v14, %v382_v19  ;;  %v449_v55 = vstv %s568_s8 }
  0x93   :  { %v405_v29 = vadd.f32 %v404_v15, %v401_v21  ;;  %v424_v30 = vadd.f32 %v423_v16, %v420_v23 }
  0x94   :  { %v371_v31 = vadd.f32 %v370_v18, %v367_v25  ;;  %v390_v32 = vadd.f32 %v389_v20, %v386_v26 }
  0x95   :  { %v409_v35 = vadd.f32 %v408_v22, %v405_v29  ;;  %v428_v36 = vadd.f32 %v427_v24, %v424_v30 }
  0x96   :  { %v374_v37 = vadd.f32 %v373_v27, %v371_v31  ;;  %v393_v38 = vadd.f32 %v392_v28, %v390_v32 }
  0x97   :  { %v412_v39 = vadd.f32 %v411_v33, %v409_v35  ;;  %v431_v40 = vadd.f32 %v430_v34, %v428_v36 }
  0x98   :  { %610 = vtanh.f32 %v374_v37 }
  0x99   :  { %612 = vtanh.f32 %v393_v38 }
  0x9a   :  { %614 = vtanh.f32 %v412_v39 }
  0x9b   :  { %616 = vtanh.f32 %v431_v40 }
  0xa5   :  { %v611_v43 = vpop.eup %610 }
  0xa6   :  { %v613_v45 = vpop.eup %612  ;;  %v435_v46 = vmul.f32 %v611_v43, %v434_v41 }
  0xa7   :  { %v615_v48 = vpop.eup %614  ;;  %v438_v49 = vmul.f32 %v613_v45, %v437_v42 }
  0xa8   :  { %v617_v50 = vpop.eup %616  ;;  %v442_v51 = vmul.f32 %v615_v48, %v441_v44 }
  0xa9   :  { %v439_v52 = vadd.f32 %v438_v49, %v435_v46  ;;  %v446_v53 = vmul.f32 %v617_v50, %v445_v47 }
  0xab   :  { %v443_v54 = vadd.f32 %v442_v51, %v439_v52 }
  0xad   :  { %v447_v56 = vadd.f32 %v446_v53, %v443_v54 }
  0xaf   :  { %v450_v57 = vadd.f32 %v449_v55, %v447_v56 }
  0xb1   :  { %451 = vst [vmem:[%s935_s2] sm:$0xff] %v450_v57 }
  0xb2   :  { %456 = vsyncpa [#allocation3], 1 }

</bundles_post_ra>
